<compile_context>
chip_gen: v7x
topology: tpu7x:2x2x1
jax: 0.10.0
libtpu: 0.0.40
codegen_flags: <defaults>
</compile_context>

<pallas_src>
import functools

import jax
import jax.numpy as jnp
from jax.experimental import pallas as pl
from jax.experimental.pallas import tpu as pltpu

HIDDEN = 64
TILE_B_MAX = 1024  # double-buffered x tile @ F<=128 lanes is ~1 MiB -> safe on v7x


def _round_up(n: int, m: int) -> int:
    return ((n + m - 1) // m) * m


def _mlp_kernel(x_ref, w1_ref, b1_ref, w2_ref, b2_ref, o_ref):
    # First layer: MXU matmul with f32 accumulation, then bias + ReLU on the VPU.
    x = x_ref[...]                                                  # (TILE_B, F)
    h = jnp.dot(x, w1_ref[...], preferred_element_type=jnp.float32)  # (TILE_B, 64) f32
    h = jnp.maximum(h + b1_ref[...], 0.0)                           # bias + ReLU (f32)

    # Second layer has output width 1: an MXU matmul would use 1/256 of the
    # output columns. Do it as a VPU multiply + XLU lane reduction instead.
    w2_row = w2_ref[...]                                            # (1, 64) f32
    y = jnp.sum(h * w2_row, axis=-1, keepdims=True)                 # (TILE_B, 1)

    o_ref[...] = jnp.tanh(y + b2_ref[...]).astype(o_ref.dtype)      # Tanh (EUP, f32)


def neural_network_forward(x, w1, b1, w2, b2, *, use_bf16_matmul: bool = False,
                           tile_b: int | None = None):
    """Pallas equivalent of NeuralNetwork.forward (Linear->ReLU->Linear->Tanh).

    x : (B, F) float32
    w1: (F, 64) float32, b1: (1, 64) float32
    w2: (64, 1) float32, b2: (1, 1) float32
    returns: (B, 1) float32
    """
    B, F = x.shape
    H = w1.shape[1]
    assert w1.shape == (F, H) and b1.shape == (1, H)
    assert w2.shape == (H, 1) and b2.shape == (1, 1)

    # Batch tile: big enough to amortize per-step overhead & the width-1 store,
    # small enough to stay well under v7x's scoped VMEM even double-buffered.
    if tile_b is None:
        tile_b = min(TILE_B_MAX, _round_up(B, 8))
    B_pad = _round_up(B, tile_b)
    if B_pad != B:
        # Zero-pad ragged batch; padded rows produce garbage that is sliced off.
        x = jnp.pad(x, ((0, B_pad - B), (0, 0)))

    # Second-layer weight as a lane-dense row for the in-kernel VPU/XLU reduce.
    w2_row = w2.reshape(1, H)

    if use_bf16_matmul:
        # Narrow only the MXU operands (v6e/v7x bf16-native MXU); accumulation,
        # biases, ReLU and tanh stay in f32 (v5e VPU/EUP have no bf16 support).
        x = x.astype(jnp.bfloat16)
        w1 = w1.astype(jnp.bfloat16)

    grid = (B_pad // tile_b,)

    cost = pl.CostEstimate(
        flops=2 * B_pad * F * H + 2 * B_pad * H,
        transcendentals=B_pad,
        bytes_accessed=(x.size * x.dtype.itemsize
                        + w1.size * w1.dtype.itemsize
                        + (b1.size + w2_row.size + b2.size) * 4
                        + B_pad * 4),
    )

    out = pl.pallas_call(
        _mlp_kernel,
        out_shape=jax.ShapeDtypeStruct((B_pad, 1), jnp.float32),
        grid_spec=pltpu.PrefetchScalarGridSpec(
            num_scalar_prefetch=0,
            grid=grid,
            in_specs=[
                pl.BlockSpec((tile_b, F), lambda i: (i, 0)),   # x: streamed per tile
                pl.BlockSpec((F, H), lambda i: (0, 0)),        # w1: resident
                pl.BlockSpec((1, H), lambda i: (0, 0)),        # b1: resident
                pl.BlockSpec((1, H), lambda i: (0, 0)),        # w2_row: resident
                pl.BlockSpec((1, 1), lambda i: (0, 0)),        # b2: resident
            ],
            out_specs=pl.BlockSpec((tile_b, 1), lambda i: (i, 0)),
        ),
        compiler_params=pltpu.CompilerParams(
            dimension_semantics=("parallel",),     # batch tiles are independent
            vmem_limit_bytes=32 * 1024 * 1024,     # safe on v5e/v6e/v7x
        ),
        cost_estimate=cost,
    )(x, w1, b1, w2_row, b2)

    return out[:B]
    # TODO(synk): for genuinely tiny feature_dim (e.g. 32) the last dim pads to
    # 128 lanes; a wrapper-level feature-packing layout change would be needed
    # to recover that 4x lane waste — out of scope for this forward-pass port.


def init_params(key, feature_dim: int, hidden: int = HIDDEN, out_dim: int = 1):
    """Deterministic init mirroring nn.Linear's U(-1/sqrt(fan_in), 1/sqrt(fan_in))."""
    k1, k2, k3, k4 = jax.random.split(key, 4)
    bound1 = 1.0 / jnp.sqrt(feature_dim)
    bound2 = 1.0 / jnp.sqrt(hidden)
    w1 = jax.random.uniform(k1, (feature_dim, hidden), jnp.float32, -bound1, bound1)
    b1 = jax.random.uniform(k2, (1, hidden), jnp.float32, -bound1, bound1)
    w2 = jax.random.uniform(k3, (hidden, out_dim), jnp.float32, -bound2, bound2)
    b2 = jax.random.uniform(k4, (1, out_dim), jnp.float32, -bound2, bound2)
    return w1, b1, w2, b2


if __name__ == "__main__":
    key = jax.random.PRNGKey(0)
    k_x, k_p = jax.random.split(key)

    batch = 8
    feature_dim = 32

    x = jax.random.normal(k_x, (batch, feature_dim), jnp.float32)
    w1, b1, w2, b2 = init_params(k_p, feature_dim)

    # Plain-JAX reference (same math, same params).
    y_ref = jnp.tanh(jnp.maximum(x @ w1 + b1, 0.0) @ w2 + b2)

    # f32 path (strict parity with nn.Linear semantics).
    y = neural_network_forward(x, w1, b1, w2, b2)
    y = jax.block_until_ready(y)
    assert y.shape == (batch, 1)
    assert jnp.allclose(y, y_ref, atol=1e-5), "f32 kernel mismatch vs reference"

    # bf16-MXU path (v6e/v7x throughput option) — looser tolerance by design.
    y_bf16 = neural_network_forward(x, w1, b1, w2, b2, use_bf16_matmul=True)
    y_bf16 = jax.block_until_ready(y_bf16)
    assert jnp.allclose(y_bf16, y_ref, atol=5e-2), "bf16 kernel mismatch vs reference"

    print("KERNEL_OK")
</pallas_src>

<mosaic_0001>
module attributes {stable_mosaic.version = 11 : i64} {
  func.func @_mlp_kernel(%arg0: i32, %arg1: memref<8x32xf32, #tpu.memory_space<vmem>>, %arg2: memref<32x64xf32, #tpu.memory_space<vmem>>, %arg3: memref<1x64xf32, #tpu.memory_space<vmem>>, %arg4: memref<1x64xf32, #tpu.memory_space<vmem>>, %arg5: memref<1x1xf32, #tpu.memory_space<vmem>>, %arg6: memref<8x1xf32, #tpu.memory_space<vmem>>) attributes {dimension_semantics = [#tpu.dimension_semantics<parallel>], iteration_bounds = array<i64: 1>, scalar_prefetch = 0 : i64, scratch_operands = 0 : i64, tpu.core_type = #tpu.core_type<tc>, window_params = [{transform_indices = @transform_0, window_bounds = array<i64: 8, 32>}, {pipeline_mode = #tpu.pipeline_mode<synchronous>, transform_indices = @transform_1, window_bounds = array<i64: 32, 64>}, {pipeline_mode = #tpu.pipeline_mode<synchronous>, transform_indices = @transform_2, window_bounds = array<i64: 1, 64>}, {pipeline_mode = #tpu.pipeline_mode<synchronous>, transform_indices = @transform_3, window_bounds = array<i64: 1, 64>}, {pipeline_mode = #tpu.pipeline_mode<synchronous>, transform_indices = @transform_4, window_bounds = array<i64: 1, 1>}, {transform_indices = @transform_5, window_bounds = array<i64: 8, 1>}]} {
    %c0 = arith.constant 0 : index
    %c0_0 = arith.constant 0 : index
    %0 = vector.load %arg1[%c0, %c0_0] : memref<8x32xf32, #tpu.memory_space<vmem>>, vector<8x32xf32>
    %c0_1 = arith.constant 0 : index
    %c0_2 = arith.constant 0 : index
    %1 = vector.load %arg2[%c0_1, %c0_2] : memref<32x64xf32, #tpu.memory_space<vmem>>, vector<32x64xf32>
    %cst = arith.constant dense<0.000000e+00> : vector<8x64xf32>
    %2 = tpu.matmul %0, %1, %cst {dimension_numbers = #tpu.dot_dimension_numbers<[1], [0], [0], [1], [0, 0, 1, 1], [], []>} : vector<8x32xf32>, vector<32x64xf32>, vector<8x64xf32> -> vector<8x64xf32>
    %c0_3 = arith.constant 0 : index
    %c0_4 = arith.constant 0 : index
    %3 = vector.load %arg3[%c0_3, %c0_4] : memref<1x64xf32, #tpu.memory_space<vmem>>, vector<1x64xf32>
    %4 = vector.broadcast %3 : vector<1x64xf32> to vector<8x64xf32>
    %5 = arith.addf %2, %4 : vector<8x64xf32>
    %cst_5 = arith.constant 0.000000e+00 : f32
    %6 = vector.broadcast %cst_5 : f32 to vector<8x64xf32>
    %7 = arith.maximumf %5, %6 : vector<8x64xf32>
    %c0_6 = arith.constant 0 : index
    %c0_7 = arith.constant 0 : index
    %8 = vector.load %arg4[%c0_6, %c0_7] : memref<1x64xf32, #tpu.memory_space<vmem>>, vector<1x64xf32>
    %9 = vector.broadcast %8 : vector<1x64xf32> to vector<8x64xf32>
    %10 = arith.mulf %7, %9 : vector<8x64xf32>
    %cst_8 = arith.constant dense<0.000000e+00> : vector<8xf32>
    %11 = vector.multi_reduction <add>, %10, %cst_8 [1] : vector<8x64xf32> to vector<8xf32>
    %12 = vector.shape_cast %11 : vector<8xf32> to vector<8x1xf32>
    %c0_9 = arith.constant 0 : index
    %c0_10 = arith.constant 0 : index
    %13 = vector.load %arg5[%c0_9, %c0_10] : memref<1x1xf32, #tpu.memory_space<vmem>>, vector<1x1xf32>
    %14 = vector.broadcast %13 : vector<1x1xf32> to vector<8x1xf32>
    %15 = arith.addf %12, %14 : vector<8x1xf32>
    %16 = math.tanh %15 : vector<8x1xf32>
    %c0_11 = arith.constant 0 : index
    %c0_12 = arith.constant 0 : index
    %17 = vector.load %arg6[%c0_11, %c0_12] : memref<8x1xf32, #tpu.memory_space<vmem>>, vector<8x1xf32>
    tpu.vector_store %arg6[%c0_11, %c0_12], %16 {strides = array<i32>} : memref<8x1xf32, #tpu.memory_space<vmem>>, vector<8x1xf32>,
    return
  }
  func.func @transform_0(%arg0: i32) -> (i32, i32) {
    %c0_i32 = arith.constant 0 : i32
    %c0_i32_0 = arith.constant 0 : i32
    return %arg0, %c0_i32 : i32, i32
  }
  func.func @transform_1(%arg0: i32) -> (i32, i32) {
    %c0_i32 = arith.constant 0 : i32
    %c0_i32_0 = arith.constant 0 : i32
    %c0_i32_1 = arith.constant 0 : i32
    return %c0_i32, %c0_i32_0 : i32, i32
  }
  func.func @transform_2(%arg0: i32) -> (i32, i32) {
    %c0_i32 = arith.constant 0 : i32
    %c0_i32_0 = arith.constant 0 : i32
    %c0_i32_1 = arith.constant 0 : i32
    return %c0_i32, %c0_i32_0 : i32, i32
  }
  func.func @transform_3(%arg0: i32) -> (i32, i32) {
    %c0_i32 = arith.constant 0 : i32
    %c0_i32_0 = arith.constant 0 : i32
    %c0_i32_1 = arith.constant 0 : i32
    return %c0_i32, %c0_i32_0 : i32, i32
  }
  func.func @transform_4(%arg0: i32) -> (i32, i32) {
    %c0_i32 = arith.constant 0 : i32
    %c0_i32_0 = arith.constant 0 : i32
    %c0_i32_1 = arith.constant 0 : i32
    return %c0_i32, %c0_i32_0 : i32, i32
  }
  func.func @transform_5(%arg0: i32) -> (i32, i32) {
    %c0_i32 = arith.constant 0 : i32
    %c0_i32_0 = arith.constant 0 : i32
    return %arg0, %c0_i32 : i32, i32
  }
}

</mosaic_0001>

<bundles_post_ra>
// kernel: tpu_custom_call.1
= control target key start
LH: loop header
LB: loop body
LE: loop exit
PB: predicated region body
PF: predicated region fallthrough
CT: control target
= control target key end

     0   :  { %s327_s0 = inlined_call_operand.hbm [shape: f32[8,32], index: 0, kind: input, shape index: {}]   ;;  %s328_s1 = inlined_call_operand.hbm [shape: f32[32,64], index: 1, kind: input, shape index: {}]   ;;  %s329_s2 = inlined_call_operand.vmem [shape: f32[1,64], index: 2, kind: input, shape index: {}]   ;;  %s330_s3 = inlined_call_operand.vmem [shape: f32[1,64], index: 3, kind: input, shape index: {}]   ;;  %s331_s4 = inlined_call_operand.<no memory space> [shape: f32[1,1], index: 4, kind: input, shape index: {}]   ;;  %s332_s5 = inlined_call_operand.vmem [shape: f32[8,1], index: 5, kind: output, shape index: {}]  }
   0x1   :  { %v10_v0 = vstv %s331_s4 }
   0x2   :  { %11 = vst [vmem:[#allocation2] sm:$0x1] %v10_v0 }
   0x3   :  { %12 = vsyncpa [#allocation4], 0 }
   0x4   :  { %13 = vsyncpa [#allocation6], 0  ;;  %s247_s20 = smov [#allocation3]   ;;  %s248_s22 = smov [#allocation5]  }
   0x5   :  { %s20_s21 = sshll.u32 %s247_s20, 4  ;;  %s29_s23 = sshll.u32 %s248_s22, 4  ;;  %s21_s21 = int_to_ptr.vmem [resolvable:$true] %s20_s21  ;;  %s287_s23 = int_to_ptr.vmem [resolvable:$true] %s29_s23 }
   0x6   :  { %s199_s26 = scalar_lea.hbm %s327_s0, 128 }
   0x7   :  { %p200_p0 = scmp.ne.s32.totalorder %s327_s0, %s199_s26  ;;  %p203_p1 = scmp.lt.u32.totalorder %s199_s26, %s327_s0 }
   0x9   :  { %p205_p2 = pnand %p203_p1, %p200_p0 }
   0xb   :  { %208 = shalt.err (!%p205_p2)
}
   0xc   :  { %s209_s30 = scalar_lea.vmem %s21_s21, 128  ;;  %p214_p4 = scmp.lt.s32.totalorder %s21_s21, %s21_s21 }
   0xd   :  { %p210_p3 = scmp.ne.s32.totalorder %s21_s21, %s209_s30  ;;  %p215_p5 = scmp.lt.s32.totalorder %s209_s30, %s209_s30 }
   0xf   :  { %p216_p6 = por %p215_p5, %p214_p4 }
  0x11   :  { %p217_p7 = pnand %p216_p6, %p210_p3 }
  0x13   :  { %220 = shalt.err (!%p217_p7)
}
  0x14   :  { %23 = dma.hbm_to_vmem [thread:$0]  %s327_s0, 128, %s21_s21, [#allocation4]  }
  0x15   :  { %s221_s10 = scalar_lea.hbm %s328_s1, 512 }
  0x16   :  { %p222_p8 = scmp.ne.s32.totalorder %s328_s1, %s221_s10  ;;  %p225_p9 = scmp.lt.u32.totalorder %s221_s10, %s328_s1 }
  0x18   :  { %p227_p10 = pnand %p225_p9, %p222_p8 }
  0x1a   :  { %230 = shalt.err (!%p227_p10)
}
  0x1b   :  { %s231_s15 = scalar_lea.vmem %s287_s23, 512  ;;  %p236_p12 = scmp.lt.s32.totalorder %s287_s23, %s287_s23 }
  0x1c   :  { %p232_p11 = scmp.ne.s32.totalorder %s287_s23, %s231_s15  ;;  %p237_p13 = scmp.lt.s32.totalorder %s231_s15, %s231_s15 }
  0x1e   :  { %p238_p0 = por %p237_p13, %p236_p12 }
  0x20   :  { %p239_p1 = pnand %p238_p0, %p232_p11 }
  0x22   :  { %242 = shalt.err (!%p239_p1)
}
  0x23   :  { %s249_s0 = smov 128   ;;  %s250_s16 = smov 8  }
  0x24   :  { %35 = dma.hbm_to_vmem [thread:$0]  %s328_s1, 512, %s287_s23, [#allocation6], %s249_s0, %s249_s0, %s250_s16  }
  0x25   :  { %243 = dma.done.wait [#allocation4], 128  }
  0x26   :  { %244 = vsyncadd [#allocation4], 4294967168 }
  0x27   :  { %245 = dma.done.wait [#allocation6], 512  }
  0x28   :  { %246 = vsyncadd [#allocation6], 4294966784  ;;  %v251_v1 = vmov 0.0|0.0   ;;  %vm252_vm0 = vmmov 0   ;;  %v253_v2 = vmov 0.0   ;;  %v49_v3 = vld [vmem:[#allocation5] sm:$0xff] }
  0x29   :  { %184 = vmatprep.subr.bf16.mxu0 %v251_v1  ;;  %181 = vmatprep.mubr.msk.f32.mxu0 %vm252_vm0, %v253_v2  ;;  %v50_v4 = vld [vmem:[#allocation5 + $0x8] sm:$0xff]  ;;  %v51_v5 = vld [vmem:[#allocation5 + $0x10] sm:$0xff]  ;;  %v52_v7 = vld [vmem:[#allocation5 + $0x18] sm:$0xff]  ;;  %vm60_vm1 = vcmask 261120   ;;  %vm143_vm2 = vcmask 523264   ;;  %vm156_vm3 = vcmask 7168  }
  0x2a   :  { %v185_v6 = vpack.c.bf16 %v50_v4, %v49_v3  ;;  %v188_v8 = vpack.c.bf16 %v52_v7, %v51_v5  ;;  %v48_v9 = vld [vmem:[#allocation3] sm:$0xff]  ;;  %v164_v10 = vld [vmem:[%s329_s2] ss:$0 sm:$0xff] }
  0x2b   :  { %v166_v14 = vld [vmem:[%s330_s3] ss:$0 sm:$0xff] }
  0x2c   :  { %186 = vmatpush3.bf16.msra.mxu0 %v185_v6  ;;  %v167_v18 = vld [vmem:[#allocation2] ss:$0 sm:$0xff] }
  0x2d   :  { %187 = vmatprep.subr.bf16.mxu0 %v251_v1 }
  0x30   :  { %189 = vmatpush3.bf16.msra.mxu0 %v188_v8 }
  0x33   :  { %182 = vmatmul.mubr.msk.f32.vlgmr.msra.gmra.mrb[0].mxu0 %vm60_vm1, %v48_v9 }
 0x106   :  { %v130_v11 = vpop.f32.mrb[0].mxu0 }
 0x107   :  { %v131_v12 = vadd.f32 %v164_v10, %v130_v11  ;;  %v183_v13 = vpop.f32.mrb[1].mxu0 }
 0x109   :  { %v134_v15 = vmax.f32 %v131_v12, 0.0 }
 0x10b   :  { %v142_v16 = vmul.f32 %v166_v14, %v134_v15 }
 0x10d   :  { %v144_v17 = vsel %vm143_vm2, %v142_v16, 0.0 }
 0x10e   :  { %145 = vadd.xlane.f32.xlu0 %v144_v17 }
 0x19b   :  { %v146_v19 = vpop.xlane.xlu0 %145 }
 0x19c   :  { %v154_v20 = vadd.f32 %v167_v18, %v146_v19 }
 0x19e   :  { %197 = vtanh.f32 %v154_v20 }
 0x1a8   :  { %v198_v21 = vpop.eup %197 }
 0x1a9   :  { %157 = vst.msk [vmem:[%s332_s5] sm:$0xff] %vm156_vm3, %v198_v21 }
 0x1aa   :  { %162 = vsyncpa [#allocation4], 1 }
 0x1ab   :  { %163 = vsyncpa [#allocation6], 1 }

</bundles_post_ra>
